<compile_context>
chip_gen: v7x
topology: tpu7x:2x2x1
jax: 0.10.0
libtpu: 0.0.40
codegen_flags: <defaults>
</compile_context>

<pallas_src>
import functools
import math

import jax
import jax.numpy as jnp
from jax import lax
from jax.experimental import pallas as pl
from jax.experimental.pallas import tpu as pltpu


def _round_up(x, m):
    return (x + m - 1) // m * m


def _tpu_vmem_budget_bytes():
    """Scoped-VMEM budget per TensorCore, leaving headroom for Mosaic internal scratch."""
    try:
        kind = jax.devices()[0].device_kind.lower()
    except Exception:  # pragma: no cover - defensive
        kind = ""
    if "v7" in kind or "7x" in kind:
        return 48 * 1024 * 1024          # 64 MiB physical on v7x: keep pipelining headroom
    if "v6" in kind or "v5" in kind or "v4" in kind:
        return 100 * 1024 * 1024         # 128 MiB physical on v4/v5e/v5p/v6e
    return 32 * 1024 * 1024              # unknown / older generation: stay conservative


def _vmem_need_bytes(tm, tn, dim, itemsize, b_cols):
    """Rough per-step VMEM requirement for tile (tm, tn); b_cols = tn (tiled B) or n_pad (resident B)."""
    return (2 * tm * dim * itemsize          # anchor rows, double-buffered
            + 2 * dim * b_cols * itemsize    # contrast columns
            + 2 * tm * 128 * 4               # lane-dense per-row loss output block
            + 4 * tm * 4                     # row-statistics scratch (m, denom, sum, count)
            + 5 * tm * tn * 4)               # f32 elementwise intermediates headroom


def _select_tiles(n, dim, itemsize, budget):
    """Return (tile_m, tile_n, n_pad, b_resident) for the auto-tiling path."""
    n16 = _round_up(n, 16)
    if n16 <= 1024:
        # Single column sweep; >= 2 row tiles so both v7x TensorCores get work.
        return max(8, n16 // 2), n16, n16, False
    # Large-N path: prefer big, MXU-friendly tiles; one of (tm, tn) divides the other so the
    # lcm padding stays equal to max(tm, tn).
    for tm in (512, 256, 128, 64):
        for tn in (2048, 1024, 512, 256, 128):
            if (tn % tm) and (tm % tn):
                continue
            if _vmem_need_bytes(tm, tn, dim, itemsize, tn) <= budget:
                n_pad = _round_up(n, max(tm, tn))
                resident = (_vmem_need_bytes(tm, tn, dim, itemsize, n_pad) <= budget
                            and n_pad // tn > 1 and n_pad // tm > 1)
                return tm, tn, n_pad, resident
    return 64, 128, _round_up(n, 128), False


def _supcon_kernel(a_ref, bt_ref, rlab_ref, clab_ref, out_ref,
                   m_sc, d_sc, p_sc, c_sc, *,
                   loss_scale, n_valid, tile_m, tile_n, mask_pad_cols, b_resident):
    i = pl.program_id(0)            # anchor (row) tile      -- "parallel"
    j = pl.program_id(1)            # contrast (column) tile -- reduction, last grid axis
    last_j = pl.num_programs(1) - 1

    @pl.when(j == 0)
    def _init():
        m_sc[...] = jnp.full((tile_m, 1), -jnp.inf, dtype=jnp.float32)
        d_sc[...] = jnp.zeros((tile_m, 1), dtype=jnp.float32)
        p_sc[...] = jnp.zeros((tile_m, 1), dtype=jnp.float32)
        c_sc[...] = jnp.zeros((tile_m, 1), dtype=jnp.float32)

    if b_resident:
        # Whole contrast matrix resident in VMEM; take this j's 128-aligned lane slice.
        col0 = pl.multiple_of(j * tile_n, 128)
        b_tile = bt_ref[:, pl.ds(col0, tile_n)]
    else:
        b_tile = bt_ref[...]

    # 1/temperature is folded into the anchor rows in the wrapper, so this MXU output is
    # already "anchor_dot_contrast / temperature".  [TM, TN], f32 accumulation.
    logits = jnp.dot(a_ref[...], b_tile, preferred_element_type=jnp.float32)

    # Running row max.  NOTE: this deliberately includes masked (self-contrast / padded)
    # logits.  The masked LSE is shift-invariant and the diagonal (1/temperature) only raises
    # the max, so this is numerically safe — do NOT "fix" it by masking the max here (that
    # would force the mask onto the fast path below and reintroduce overflow risk).
    m_prev = m_sc[...]
    m_new = jnp.maximum(m_prev, jnp.max(logits, axis=1, keepdims=True))
    alpha = jnp.exp(m_prev - m_new)
    m_sc[...] = m_new

    same = rlab_ref[...] == clab_ref[...]      # positive-label equality, [TM, TN] bool

    # Only tiles touching the self-contrast diagonal (or the padded last column tile) pay for
    # the iota/keep masking; everything else takes the unmasked VALU fast path.
    touches_diag = jnp.logical_and(i * tile_m < (j + 1) * tile_n,
                                   j * tile_n < (i + 1) * tile_m)
    needs_mask = touches_diag
    if mask_pad_cols:
        needs_mask = jnp.logical_or(needs_mask, j == last_j)

    @pl.when(needs_mask)
    def _masked_tile():
        ri = i * tile_m + lax.broadcasted_iota(jnp.int32, (tile_m, tile_n), 0)
        ci = j * tile_n + lax.broadcasted_iota(jnp.int32, (tile_m, tile_n), 1)
        keep = ri != ci                            # logits_mask: exclude self-contrast
        if mask_pad_cols:
            keep = keep & (ci < n_valid)           # exclude padded contrast columns
        pos = same & keep
        e = jnp.where(keep, jnp.exp(logits - m_new), 0.0)
        d_sc[...] = alpha * d_sc[...] + jnp.sum(e, axis=1, keepdims=True)
        p_sc[...] = p_sc[...] + jnp.sum(jnp.where(pos, logits, 0.0), axis=1, keepdims=True)
        c_sc[...] = c_sc[...] + jnp.sum(jnp.where(pos, 1.0, 0.0), axis=1, keepdims=True)

    @pl.when(jnp.logical_not(needs_mask))
    def _fast_tile():
        e = jnp.exp(logits - m_new)
        d_sc[...] = alpha * d_sc[...] + jnp.sum(e, axis=1, keepdims=True)
        p_sc[...] = p_sc[...] + jnp.sum(jnp.where(same, logits, 0.0), axis=1, keepdims=True)
        c_sc[...] = c_sc[...] + jnp.sum(jnp.where(same, 1.0, 0.0), axis=1, keepdims=True)

    @pl.when(j == last_j)
    def _finalize():
        lse = m_sc[...] + jnp.log(d_sc[...])               # masked logsumexp per row
        cnt = c_sc[...]
        mean_log_prob_pos = (p_sc[...] - cnt * lse) / (cnt + 1e-8)
        loss_rows = (-loss_scale) * mean_log_prob_pos      # [TM, 1]
        out_ref[...] = jnp.broadcast_to(loss_rows, (tile_m, 128))   # lane-dense store


def supcon_loss(features, labels=None, mask=None, temperature=0.07,
                contrast_mode='all', base_temperature=0.07,
                block_m=None, block_n=None, b_resident=None):
    """features: [bsz, n_views, ...]; labels: [bsz] int. Returns scalar loss."""
    if features.ndim < 3:
        raise ValueError('`features` needs to be [bsz, n_views, ...]')
    bsz, n_views = features.shape[0], features.shape[1]
    feat = features.reshape(bsz, n_views, -1)
    dim = feat.shape[-1]

    if labels is not None and mask is not None:
        raise ValueError('Cannot define both `labels` and `mask`')
    if mask is not None or (labels is not None and labels.ndim == 2):
        # TODO(synk): explicit asymmetric `mask` / multi-hot-label paths need a mask-tile kernel variant.
        raise NotImplementedError('only integer `labels` / SimCLR (None) paths are implemented')
    if labels is None:
        lab = jnp.arange(bsz, dtype=jnp.int32)        # eye mask == equality of unique labels
    else:
        lab = labels.reshape(-1).astype(jnp.int32)
        if lab.shape[0] != bsz:
            raise ValueError('Num of labels does not match num of features')

    if contrast_mode != 'all':
        # TODO(synk): contrast_mode == 'one' (anchor = first view only) not wired in.
        raise ValueError('Only contrast_mode="all" is implemented')

    n = bsz * n_views
    # torch.cat(torch.unbind(features, dim=1), dim=0): view-major concat; row k -> sample k % bsz
    cfeat = jnp.transpose(feat, (1, 0, 2)).reshape(n, dim)
    full_lab = jnp.tile(lab, n_views)

    # Fold 1/temperature into the anchor rows once (O(N*D)) instead of an O(N^2) per-tile
    # VALU multiply on the logits.  The contrast side stays unscaled.
    inv_temp = 1.0 / float(temperature)
    anchor = (cfeat.astype(jnp.float32) * inv_temp).astype(cfeat.dtype)

    itemsize = jnp.dtype(cfeat.dtype).itemsize
    vmem_budget = _tpu_vmem_budget_bytes()

    # ---- tile selection & padding ----
    if block_m is None or block_n is None:
        tm, tn, n_pad, auto_res = _select_tiles(n, dim, itemsize, vmem_budget)
    else:
        tm, tn = int(block_m), int(block_n)
        assert tm > 0 and tm % 8 == 0, 'block_m must be a positive multiple of 8'
        assert tn > 0 and tn % 128 == 0, 'block_n must be a positive multiple of 128'
        n_pad = _round_up(n, (tm * tn) // math.gcd(tm, tn))
        auto_res = _vmem_need_bytes(tm, tn, dim, itemsize, n_pad) <= vmem_budget
    use_resident = auto_res if b_resident is None else bool(b_resident)
    use_resident = (use_resident and tn % 128 == 0
                    and n_pad // tn > 1 and n_pad // tm > 1)

    pad_rows = n_pad - n
    if pad_rows:
        anchor = jnp.pad(anchor, ((0, pad_rows), (0, 0)))
        cfeat = jnp.pad(cfeat, ((0, pad_rows), (0, 0)))
        full_lab = jnp.pad(full_lab, (0, pad_rows), constant_values=-1)
    contrast_t = cfeat.T                       # pre-transposed RHS: [D, N_pad]
    rlab = full_lab.reshape(n_pad, 1)
    clab = full_lab.reshape(1, n_pad)

    grid = (n_pad // tm, n_pad // tn)
    kernel = functools.partial(
        _supcon_kernel,
        loss_scale=float(temperature) / float(base_temperature),
        n_valid=n,
        tile_m=tm, tile_n=tn,
        mask_pad_cols=(n_pad != n),
        b_resident=use_resident,
    )

    if use_resident:
        b_spec = pl.BlockSpec((dim, n_pad), lambda i, j: (0, 0))   # fetched once, resident
    else:
        b_spec = pl.BlockSpec((dim, tn), lambda i, j: (0, j))      # streamed per column tile

    b_reads = 1 if use_resident else grid[0]
    cost = pl.CostEstimate(
        flops=2 * n_pad * n_pad * dim,
        transcendentals=n_pad * n_pad,
        bytes_accessed=int(n_pad * dim * itemsize                 # anchor rows
                           + b_reads * n_pad * dim * itemsize     # contrast columns
                           + 2 * n_pad * 4                        # labels
                           + n_pad * 128 * 4),                    # per-row loss output
    )

    out = pl.pallas_call(
        kernel,
        out_shape=jax.ShapeDtypeStruct((n_pad, 128), jnp.float32),
        grid_spec=pltpu.PrefetchScalarGridSpec(
            num_scalar_prefetch=0,
            grid=grid,
            in_specs=[
                pl.BlockSpec((tm, dim), lambda i, j: (i, 0)),   # anchor feature rows (pre-scaled)
                b_spec,                                          # contrast feature cols (pre-T)
                pl.BlockSpec((tm, 1), lambda i, j: (i, 0)),      # row labels
                pl.BlockSpec((1, tn), lambda i, j: (0, j)),      # col labels
            ],
            out_specs=pl.BlockSpec((tm, 128), lambda i, j: (i, 0)),
            scratch_shapes=[pltpu.VMEM((tm, 1), jnp.float32)] * 4,   # m, denom, sum(m*l), count
        ),
        compiler_params=pltpu.CompilerParams(
            dimension_semantics=("parallel", "arbitrary"),
            vmem_limit_bytes=vmem_budget,
        ),
        cost_estimate=cost,
    )(anchor, contrast_t, rlab, clab)

    # loss.view(anchor_count, batch_size).mean() == mean over all N real anchors
    return jnp.mean(out[:n, 0])


def _supcon_loss_ref(features, labels, temperature=0.07, base_temperature=0.07):
    """Pure-JAX reference mirroring the PyTorch forward ('all' mode, labels given)."""
    bsz, n_views = features.shape[0], features.shape[1]
    feat = features.reshape(bsz, n_views, -1).astype(jnp.float32)
    labels = labels.reshape(-1, 1)
    base_mask = (labels == labels.T).astype(jnp.float32)
    cf = jnp.transpose(feat, (1, 0, 2)).reshape(n_views * bsz, -1)
    n = n_views * bsz
    adc = (cf @ cf.T) / temperature
    logits = adc - jnp.max(adc, axis=1, keepdims=True)
    mask = jnp.tile(base_mask, (n_views, n_views))
    logits_mask = 1.0 - jnp.eye(n, dtype=jnp.float32)
    mask = mask * logits_mask
    exp_logits = jnp.exp(logits) * logits_mask
    log_prob = logits - jnp.log(jnp.sum(exp_logits, axis=1, keepdims=True))
    mlpp = jnp.sum(mask * log_prob, axis=1) / (jnp.sum(mask, axis=1) + 1e-8)
    loss = -(temperature / base_temperature) * mlpp
    return jnp.mean(loss)


if __name__ == "__main__":
    key = jax.random.PRNGKey(0)
    k1, k2, k3, k4 = jax.random.split(key, 4)

    # ---- small case: auto tiles (2 row tiles x 1 column tile), supervised + SimCLR paths ----
    bsz, n_views, dim = 8, 2, 32
    feats = jax.random.normal(k1, (bsz, n_views, dim), dtype=jnp.float32)
    feats = feats / jnp.linalg.norm(feats, axis=-1, keepdims=True)
    labels = jax.random.randint(k2, (bsz,), 0, 3)

    out = jax.block_until_ready(supcon_loss(feats, labels=labels))
    ref = jax.block_until_ready(_supcon_loss_ref(feats, labels))
    assert jnp.allclose(out, ref, rtol=2e-3, atol=2e-3), (out, ref)

    out_u = jax.block_until_ready(supcon_loss(feats))                      # unsupervised (eye)
    ref_u = jax.block_until_ready(_supcon_loss_ref(feats, jnp.arange(bsz)))
    assert jnp.allclose(out_u, ref_u, rtol=2e-3, atol=2e-3), (out_u, ref_u)

    # ---- tiled + padded case: online column reduction, pad masking, fast/masked tile gating,
    #      and the VMEM-resident contrast matrix path (auto-enabled for this size) ----
    bsz2, n_views2, dim2 = 100, 2, 48        # N=200 -> padded to 256 with TM=64, TN=128
    feats2 = jax.random.normal(k3, (bsz2, n_views2, dim2), dtype=jnp.float32)
    feats2 = feats2 / jnp.linalg.norm(feats2, axis=-1, keepdims=True)
    labels2 = jax.random.randint(k4, (bsz2,), 0, 5)
    ref2 = jax.block_until_ready(_supcon_loss_ref(feats2, labels2))

    out2 = jax.block_until_ready(
        supcon_loss(feats2, labels=labels2, block_m=64, block_n=128))
    assert jnp.allclose(out2, ref2, rtol=2e-3, atol=2e-3), (out2, ref2)

    # same shapes with the streamed (non-resident) contrast BlockSpec forced on
    out2s = jax.block_until_ready(
        supcon_loss(feats2, labels=labels2, block_m=64, block_n=128, b_resident=False))
    assert jnp.allclose(out2s, ref2, rtol=2e-3, atol=2e-3), (out2s, ref2)

    # ---- bf16 MXU operands (full-rate path), f32 accumulation ----
    out3 = jax.block_until_ready(
        supcon_loss(feats2.astype(jnp.bfloat16), labels=labels2,
                    block_m=64, block_n=128))
    ref3 = jax.block_until_ready(
        _supcon_loss_ref(feats2.astype(jnp.bfloat16).astype(jnp.float32), labels2))
    assert jnp.allclose(out3, ref3, rtol=3e-2, atol=3e-2), (out3, ref3)

    print("KERNEL_OK")
</pallas_src>

<mosaic_0001>
module attributes {stable_mosaic.version = 11 : i64} {
  func.func @_supcon_kernel(%arg0: i32, %arg1: i32, %arg2: memref<8x32xf32, #tpu.memory_space<vmem>>, %arg3: memref<32x16xf32, #tpu.memory_space<vmem>>, %arg4: memref<8x1xi32, #tpu.memory_space<vmem>>, %arg5: memref<1x16xi32, #tpu.memory_space<vmem>>, %arg6: memref<8x128xf32, #tpu.memory_space<vmem>>, %arg7: memref<8x1xf32, #tpu.memory_space<vmem>>, %arg8: memref<8x1xf32, #tpu.memory_space<vmem>>, %arg9: memref<8x1xf32, #tpu.memory_space<vmem>>, %arg10: memref<8x1xf32, #tpu.memory_space<vmem>>) attributes {dimension_semantics = [#tpu.dimension_semantics<parallel>, #tpu.dimension_semantics<arbitrary>], iteration_bounds = array<i64: 2, 1>, scalar_prefetch = 0 : i64, scratch_operands = 4 : i64, tpu.core_type = #tpu.core_type<tc>, window_params = [{transform_indices = @transform_0, window_bounds = array<i64: 8, 32>}, {transform_indices = @transform_1, window_bounds = array<i64: 32, 16>}, {transform_indices = @transform_2, window_bounds = array<i64: 8, 1>}, {transform_indices = @transform_3, window_bounds = array<i64: 1, 16>}, {transform_indices = @transform_4, window_bounds = array<i64: 8, 128>}]} {
    %c0_i32 = arith.constant 0 : i32
    %0 = arith.cmpi eq, %arg1, %c0_i32 : i32
    %1 = arith.extui %0 : i1 to i32
    %c0_i32_0 = arith.constant 0 : i32
    %2 = arith.cmpi ne, %1, %c0_i32_0 : i32
    scf.if %2 {
      %cst_20 = arith.constant 0xFF800000 : f32
      %35 = vector.broadcast %cst_20 : f32 to vector<8x1xf32>
      %c0_21 = arith.constant 0 : index
      %c0_22 = arith.constant 0 : index
      %36 = vector.load %arg7[%c0_21, %c0_22] : memref<8x1xf32, #tpu.memory_space<vmem>>, vector<8x1xf32>
      tpu.vector_store %arg7[%c0_21, %c0_22], %35 {strides = array<i32>} : memref<8x1xf32, #tpu.memory_space<vmem>>, vector<8x1xf32>,
      %cst_23 = arith.constant 0.000000e+00 : f32
      %37 = vector.broadcast %cst_23 : f32 to vector<8x1xf32>
      %c0_24 = arith.constant 0 : index
      %c0_25 = arith.constant 0 : index
      %38 = vector.load %arg8[%c0_24, %c0_25] : memref<8x1xf32, #tpu.memory_space<vmem>>, vector<8x1xf32>
      tpu.vector_store %arg8[%c0_24, %c0_25], %37 {strides = array<i32>} : memref<8x1xf32, #tpu.memory_space<vmem>>, vector<8x1xf32>,
      %cst_26 = arith.constant 0.000000e+00 : f32
      %39 = vector.broadcast %cst_26 : f32 to vector<8x1xf32>
      %c0_27 = arith.constant 0 : index
      %c0_28 = arith.constant 0 : index
      %40 = vector.load %arg9[%c0_27, %c0_28] : memref<8x1xf32, #tpu.memory_space<vmem>>, vector<8x1xf32>
      tpu.vector_store %arg9[%c0_27, %c0_28], %39 {strides = array<i32>} : memref<8x1xf32, #tpu.memory_space<vmem>>, vector<8x1xf32>,
      %cst_29 = arith.constant 0.000000e+00 : f32
      %41 = vector.broadcast %cst_29 : f32 to vector<8x1xf32>
      %c0_30 = arith.constant 0 : index
      %c0_31 = arith.constant 0 : index
      %42 = vector.load %arg10[%c0_30, %c0_31] : memref<8x1xf32, #tpu.memory_space<vmem>>, vector<8x1xf32>
      tpu.vector_store %arg10[%c0_30, %c0_31], %41 {strides = array<i32>} : memref<8x1xf32, #tpu.memory_space<vmem>>, vector<8x1xf32>,
    } else {
    }
    %c0 = arith.constant 0 : index
    %c0_1 = arith.constant 0 : index
    %3 = vector.load %arg3[%c0, %c0_1] : memref<32x16xf32, #tpu.memory_space<vmem>>, vector<32x16xf32>
    %c0_2 = arith.constant 0 : index
    %c0_3 = arith.constant 0 : index
    %4 = vector.load %arg2[%c0_2, %c0_3] : memref<8x32xf32, #tpu.memory_space<vmem>>, vector<8x32xf32>
    %cst = arith.constant dense<0.000000e+00> : vector<8x16xf32>
    %5 = tpu.matmul %4, %3, %cst {dimension_numbers = #tpu.dot_dimension_numbers<[1], [0], [0], [1], [0, 0, 1, 1], [], []>} : vector<8x32xf32>, vector<32x16xf32>, vector<8x16xf32> -> vector<8x16xf32>
    %c0_4 = arith.constant 0 : index
    %c0_5 = arith.constant 0 : index
    %6 = vector.load %arg7[%c0_4, %c0_5] : memref<8x1xf32, #tpu.memory_space<vmem>>, vector<8x1xf32>
    %cst_6 = arith.constant dense<0xFF800000> : vector<8xf32>
    %7 = vector.multi_reduction <maximumf>, %5, %cst_6 [1] : vector<8x16xf32> to vector<8xf32>
    %8 = vector.shape_cast %7 : vector<8xf32> to vector<8x1xf32>
    %9 = arith.maximumf %6, %8 : vector<8x1xf32>
    %10 = arith.subf %6, %9 : vector<8x1xf32>
    %11 = math.exp %10 : vector<8x1xf32>
    %c0_7 = arith.constant 0 : index
    %c0_8 = arith.constant 0 : index
    %12 = vector.load %arg7[%c0_7, %c0_8] : memref<8x1xf32, #tpu.memory_space<vmem>>, vector<8x1xf32>
    tpu.vector_store %arg7[%c0_7, %c0_8], %9 {strides = array<i32>} : memref<8x1xf32, #tpu.memory_space<vmem>>, vector<8x1xf32>,
    %c0_9 = arith.constant 0 : index
    %c0_10 = arith.constant 0 : index
    %13 = vector.load %arg4[%c0_9, %c0_10] : memref<8x1xi32, #tpu.memory_space<vmem>>, vector<8x1xi32>
    %c0_11 = arith.constant 0 : index
    %c0_12 = arith.constant 0 : index
    %14 = vector.load %arg5[%c0_11, %c0_12] : memref<1x16xi32, #tpu.memory_space<vmem>>, vector<1x16xi32>
    %15 = vector.broadcast %13 : vector<8x1xi32> to vector<8x16xi32>
    %16 = vector.broadcast %14 : vector<1x16xi32> to vector<8x16xi32>
    %17 = arith.cmpi eq, %15, %16 : vector<8x16xi32>
    %c8_i32 = arith.constant 8 : i32
    %18 = arith.muli %arg0, %c8_i32 : i32
    %c1_i32 = arith.constant 1 : i32
    %19 = arith.addi %arg1, %c1_i32 : i32
    %c16_i32 = arith.constant 16 : i32
    %20 = arith.muli %19, %c16_i32 : i32
    %21 = arith.cmpi slt, %18, %20 : i32
    %c16_i32_13 = arith.constant 16 : i32
    %22 = arith.muli %arg1, %c16_i32_13 : i32
    %c1_i32_14 = arith.constant 1 : i32
    %23 = arith.addi %arg0, %c1_i32_14 : i32
    %c8_i32_15 = arith.constant 8 : i32
    %24 = arith.muli %23, %c8_i32_15 : i32
    %25 = arith.cmpi slt, %22, %24 : i32
    %26 = arith.andi %21, %25 : i1
    %27 = arith.extui %26 : i1 to i32
    %c0_i32_16 = arith.constant 0 : i32
    %28 = arith.cmpi ne, %27, %c0_i32_16 : i32
    scf.if %28 {
      %c8_i32_20 = arith.constant 8 : i32
      %35 = arith.muli %arg0, %c8_i32_20 : i32
      %36 = tpu.iota {dimensions = array<i32: 0>} : vector<8x16xi32>
      %37 = vector.broadcast %35 : i32 to vector<8x16xi32>
      %38 = arith.addi %37, %36 : vector<8x16xi32>
      %c16_i32_21 = arith.constant 16 : i32
      %39 = arith.muli %arg1, %c16_i32_21 : i32
      %40 = tpu.iota {dimensions = array<i32: 1>} : vector<8x16xi32>
      %41 = vector.broadcast %39 : i32 to vector<8x16xi32>
      %42 = arith.addi %41, %40 : vector<8x16xi32>
      %43 = arith.cmpi ne, %38, %42 : vector<8x16xi32>
      %44 = arith.andi %17, %43 : vector<8x16xi1>
      %45 = vector.broadcast %9 : vector<8x1xf32> to vector<8x16xf32>
      %46 = arith.subf %5, %45 : vector<8x16xf32>
      %47 = math.exp %46 : vector<8x16xf32>
      %cst_22 = arith.constant 0.000000e+00 : f32
      %48 = vector.broadcast %cst_22 : f32 to vector<8x16xf32>
      %49 = arith.select %43, %47, %48 : vector<8x16xi1>, vector<8x16xf32>
      %c0_23 = arith.constant 0 : index
      %c0_24 = arith.constant 0 : index
      %50 = vector.load %arg8[%c0_23, %c0_24] : memref<8x1xf32, #tpu.memory_space<vmem>>, vector<8x1xf32>
      %51 = arith.mulf %11, %50 : vector<8x1xf32>
      %cst_25 = arith.constant dense<0.000000e+00> : vector<8xf32>
      %52 = vector.multi_reduction <add>, %49, %cst_25 [1] : vector<8x16xf32> to vector<8xf32>
      %53 = vector.shape_cast %52 : vector<8xf32> to vector<8x1xf32>
      %54 = arith.addf %51, %53 : vector<8x1xf32>
      %c0_26 = arith.constant 0 : index
      %c0_27 = arith.constant 0 : index
      %55 = vector.load %arg8[%c0_26, %c0_27] : memref<8x1xf32, #tpu.memory_space<vmem>>, vector<8x1xf32>
      tpu.vector_store %arg8[%c0_26, %c0_27], %54 {strides = array<i32>} : memref<8x1xf32, #tpu.memory_space<vmem>>, vector<8x1xf32>,
      %c0_28 = arith.constant 0 : index
      %c0_29 = arith.constant 0 : index
      %56 = vector.load %arg9[%c0_28, %c0_29] : memref<8x1xf32, #tpu.memory_space<vmem>>, vector<8x1xf32>
      %cst_30 = arith.constant 0.000000e+00 : f32
      %57 = vector.broadcast %cst_30 : f32 to vector<8x16xf32>
      %58 = arith.select %44, %5, %57 : vector<8x16xi1>, vector<8x16xf32>
      %cst_31 = arith.constant dense<0.000000e+00> : vector<8xf32>
      %59 = vector.multi_reduction <add>, %58, %cst_31 [1] : vector<8x16xf32> to vector<8xf32>
      %60 = vector.shape_cast %59 : vector<8xf32> to vector<8x1xf32>
      %61 = arith.addf %56, %60 : vector<8x1xf32>
      %c0_32 = arith.constant 0 : index
      %c0_33 = arith.constant 0 : index
      %62 = vector.load %arg9[%c0_32, %c0_33] : memref<8x1xf32, #tpu.memory_space<vmem>>, vector<8x1xf32>
      tpu.vector_store %arg9[%c0_32, %c0_33], %61 {strides = array<i32>} : memref<8x1xf32, #tpu.memory_space<vmem>>, vector<8x1xf32>,
      %c0_34 = arith.constant 0 : index
      %c0_35 = arith.constant 0 : index
      %63 = vector.load %arg10[%c0_34, %c0_35] : memref<8x1xf32, #tpu.memory_space<vmem>>, vector<8x1xf32>
      %cst_36 = arith.constant 1.000000e+00 : f32
      %cst_37 = arith.constant 0.000000e+00 : f32
      %64 = vector.broadcast %cst_36 : f32 to vector<8x16xf32>
      %65 = vector.broadcast %cst_37 : f32 to vector<8x16xf32>
      %66 = arith.select %44, %64, %65 : vector<8x16xi1>, vector<8x16xf32>
      %cst_38 = arith.constant dense<0.000000e+00> : vector<8xf32>
      %67 = vector.multi_reduction <add>, %66, %cst_38 [1] : vector<8x16xf32> to vector<8xf32>
      %68 = vector.shape_cast %67 : vector<8xf32> to vector<8x1xf32>
      %69 = arith.addf %63, %68 : vector<8x1xf32>
      %c0_39 = arith.constant 0 : index
      %c0_40 = arith.constant 0 : index
      %70 = vector.load %arg10[%c0_39, %c0_40] : memref<8x1xf32, #tpu.memory_space<vmem>>, vector<8x1xf32>
      tpu.vector_store %arg10[%c0_39, %c0_40], %69 {strides = array<i32>} : memref<8x1xf32, #tpu.memory_space<vmem>>, vector<8x1xf32>,
    } else {
    }
    %true = arith.constant true
    %29 = arith.xori %26, %true : i1
    %30 = arith.extui %29 : i1 to i32
    %c0_i32_17 = arith.constant 0 : i32
    %31 = arith.cmpi ne, %30, %c0_i32_17 : i32
    scf.if %31 {
      %35 = vector.broadcast %9 : vector<8x1xf32> to vector<8x16xf32>
      %36 = arith.subf %5, %35 : vector<8x16xf32>
      %37 = math.exp %36 : vector<8x16xf32>
      %c0_20 = arith.constant 0 : index
      %c0_21 = arith.constant 0 : index
      %38 = vector.load %arg8[%c0_20, %c0_21] : memref<8x1xf32, #tpu.memory_space<vmem>>, vector<8x1xf32>
      %39 = arith.mulf %11, %38 : vector<8x1xf32>
      %cst_22 = arith.constant dense<0.000000e+00> : vector<8xf32>
      %40 = vector.multi_reduction <add>, %37, %cst_22 [1] : vector<8x16xf32> to vector<8xf32>
      %41 = vector.shape_cast %40 : vector<8xf32> to vector<8x1xf32>
      %42 = arith.addf %39, %41 : vector<8x1xf32>
      %c0_23 = arith.constant 0 : index
      %c0_24 = arith.constant 0 : index
      %43 = vector.load %arg8[%c0_23, %c0_24] : memref<8x1xf32, #tpu.memory_space<vmem>>, vector<8x1xf32>
      tpu.vector_store %arg8[%c0_23, %c0_24], %42 {strides = array<i32>} : memref<8x1xf32, #tpu.memory_space<vmem>>, vector<8x1xf32>,
      %c0_25 = arith.constant 0 : index
      %c0_26 = arith.constant 0 : index
      %44 = vector.load %arg9[%c0_25, %c0_26] : memref<8x1xf32, #tpu.memory_space<vmem>>, vector<8x1xf32>
      %cst_27 = arith.constant 0.000000e+00 : f32
      %45 = vector.broadcast %cst_27 : f32 to vector<8x16xf32>
      %46 = arith.select %17, %5, %45 : vector<8x16xi1>, vector<8x16xf32>
      %cst_28 = arith.constant dense<0.000000e+00> : vector<8xf32>
      %47 = vector.multi_reduction <add>, %46, %cst_28 [1] : vector<8x16xf32> to vector<8xf32>
      %48 = vector.shape_cast %47 : vector<8xf32> to vector<8x1xf32>
      %49 = arith.addf %44, %48 : vector<8x1xf32>
      %c0_29 = arith.constant 0 : index
      %c0_30 = arith.constant 0 : index
      %50 = vector.load %arg9[%c0_29, %c0_30] : memref<8x1xf32, #tpu.memory_space<vmem>>, vector<8x1xf32>
      tpu.vector_store %arg9[%c0_29, %c0_30], %49 {strides = array<i32>} : memref<8x1xf32, #tpu.memory_space<vmem>>, vector<8x1xf32>,
      %c0_31 = arith.constant 0 : index
      %c0_32 = arith.constant 0 : index
      %51 = vector.load %arg10[%c0_31, %c0_32] : memref<8x1xf32, #tpu.memory_space<vmem>>, vector<8x1xf32>
      %cst_33 = arith.constant 1.000000e+00 : f32
      %cst_34 = arith.constant 0.000000e+00 : f32
      %52 = vector.broadcast %cst_33 : f32 to vector<8x16xf32>
      %53 = vector.broadcast %cst_34 : f32 to vector<8x16xf32>
      %54 = arith.select %17, %52, %53 : vector<8x16xi1>, vector<8x16xf32>
      %cst_35 = arith.constant dense<0.000000e+00> : vector<8xf32>
      %55 = vector.multi_reduction <add>, %54, %cst_35 [1] : vector<8x16xf32> to vector<8xf32>
      %56 = vector.shape_cast %55 : vector<8xf32> to vector<8x1xf32>
      %57 = arith.addf %51, %56 : vector<8x1xf32>
      %c0_36 = arith.constant 0 : index
      %c0_37 = arith.constant 0 : index
      %58 = vector.load %arg10[%c0_36, %c0_37] : memref<8x1xf32, #tpu.memory_space<vmem>>, vector<8x1xf32>
      tpu.vector_store %arg10[%c0_36, %c0_37], %57 {strides = array<i32>} : memref<8x1xf32, #tpu.memory_space<vmem>>, vector<8x1xf32>,
    } else {
    }
    %c0_i32_18 = arith.constant 0 : i32
    %32 = arith.cmpi eq, %arg1, %c0_i32_18 : i32
    %33 = arith.extui %32 : i1 to i32
    %c0_i32_19 = arith.constant 0 : i32
    %34 = arith.cmpi ne, %33, %c0_i32_19 : i32
    scf.if %34 {
      %c0_20 = arith.constant 0 : index
      %c0_21 = arith.constant 0 : index
      %35 = vector.load %arg7[%c0_20, %c0_21] : memref<8x1xf32, #tpu.memory_space<vmem>>, vector<8x1xf32>
      %c0_22 = arith.constant 0 : index
      %c0_23 = arith.constant 0 : index
      %36 = vector.load %arg8[%c0_22, %c0_23] : memref<8x1xf32, #tpu.memory_space<vmem>>, vector<8x1xf32>
      %37 = math.log %36 : vector<8x1xf32>
      %38 = arith.addf %35, %37 : vector<8x1xf32>
      %c0_24 = arith.constant 0 : index
      %c0_25 = arith.constant 0 : index
      %39 = vector.load %arg10[%c0_24, %c0_25] : memref<8x1xf32, #tpu.memory_space<vmem>>, vector<8x1xf32>
      %c0_26 = arith.constant 0 : index
      %c0_27 = arith.constant 0 : index
      %40 = vector.load %arg9[%c0_26, %c0_27] : memref<8x1xf32, #tpu.memory_space<vmem>>, vector<8x1xf32>
      %41 = arith.mulf %39, %38 : vector<8x1xf32>
      %42 = arith.subf %40, %41 : vector<8x1xf32>
      %cst_28 = arith.constant 9.99999993E-9 : f32
      %43 = vector.broadcast %cst_28 : f32 to vector<8x1xf32>
      %44 = arith.addf %39, %43 : vector<8x1xf32>
      %45 = arith.divf %42, %44 : vector<8x1xf32>
      %cst_29 = arith.constant -1.000000e+00 : f32
      %46 = vector.broadcast %cst_29 : f32 to vector<8x1xf32>
      %47 = arith.mulf %46, %45 : vector<8x1xf32>
      %48 = vector.shape_cast %47 : vector<8x1xf32> to vector<8x1xf32>
      %49 = vector.broadcast %48 : vector<8x1xf32> to vector<8x128xf32>
      %c0_30 = arith.constant 0 : index
      %c0_31 = arith.constant 0 : index
      %50 = vector.load %arg6[%c0_30, %c0_31] : memref<8x128xf32, #tpu.memory_space<vmem>>, vector<8x128xf32>
      tpu.vector_store %arg6[%c0_30, %c0_31], %49 {strides = array<i32>} : memref<8x128xf32, #tpu.memory_space<vmem>>, vector<8x128xf32>,
    } else {
    }
    return
  }
  func.func @transform_0(%arg0: i32, %arg1: i32) -> (i32, i32) {
    %c0_i32 = arith.constant 0 : i32
    %c0_i32_0 = arith.constant 0 : i32
    return %arg0, %c0_i32 : i32, i32
  }
  func.func @transform_1(%arg0: i32, %arg1: i32) -> (i32, i32) {
    %c0_i32 = arith.constant 0 : i32
    %c0_i32_0 = arith.constant 0 : i32
    return %c0_i32, %arg1 : i32, i32
  }
  func.func @transform_2(%arg0: i32, %arg1: i32) -> (i32, i32) {
    %c0_i32 = arith.constant 0 : i32
    %c0_i32_0 = arith.constant 0 : i32
    return %arg0, %c0_i32 : i32, i32
  }
  func.func @transform_3(%arg0: i32, %arg1: i32) -> (i32, i32) {
    %c0_i32 = arith.constant 0 : i32
    %c0_i32_0 = arith.constant 0 : i32
    return %c0_i32, %arg1 : i32, i32
  }
  func.func @transform_4(%arg0: i32, %arg1: i32) -> (i32, i32) {
    %c0_i32 = arith.constant 0 : i32
    %c0_i32_0 = arith.constant 0 : i32
    return %arg0, %c0_i32 : i32, i32
  }
}

</mosaic_0001>

<bundles_post_ra>
// kernel: tpu_custom_call.1
= control target key start
LH: loop header
LB: loop body
LE: loop exit
PB: predicated region body
PF: predicated region fallthrough
CT: control target
= control target key end

     0   :  { %9 = vsyncpa [#allocation7], 0  ;;  %s1008_s0 = inlined_call_operand.vmem [shape: f32[16,32], index: 0, kind: input, shape index: {}]   ;;  %s1009_s1 = inlined_call_operand.vmem [shape: f32[32,16], index: 1, kind: input, shape index: {}]   ;;  %s1010_s2 = inlined_call_operand.vmem [shape: s32[16,1], index: 2, kind: input, shape index: {}]   ;;  %s1011_s3 = inlined_call_operand.vmem [shape: s32[1,16], index: 3, kind: input, shape index: {}]   ;;  %s1012_s4 = inlined_call_operand.hbm [shape: f32[16,128], index: 4, kind: output, shape index: {}]  }
   0x1   :  { %11 = vsyncpa [#allocation7 + $0x1], 0  ;;  %s824_s15 = smov 0   ;;  %s826_s16 = smov 0  }
   0x2   :  { %s828_s17 = smov 0   ;;  %s830_s18 = smov 0  }
   0x3   :  { %s832_s19 = smov 0   ;;  %s834_s20 = smov 0  }
   0x4 LB: > { %s588_s21 = sadd.s32 4294967295, %s787_s20   ;;  %s589_s22 = sadd.s32 4294967294, %s787_s20   ;;  %s787_s20 = sphi %s834_s20, %s17_s20   ;;  %s783_s19 = sphi %s832_s19, %s1020_s19   ;;  %s779_s18 = sphi %s830_s18, %s1019_s18   ;;  %s775_s17 = sphi %s828_s17, %s1018_s17   ;;  %s771_s16 = sphi %s826_s16, %s1017_s16   ;;  %s767_s15 = sphi %s824_s15, %s1016_s15  }
   0x5   : > { %s29_s23 = sadd.s32 1, %s783_s19  ;;  %s140_s24 = sadd.s32 1, %s775_s17 }
   0x6   : > { %p31_p0 = scmp.ge.s32.totalorder %s29_s23, 2  ;;  %p150_p1 = scmp.ne.s32.totalorder %s775_s17, %s771_s16 }
   0x7   : > { %p151_p2 = scmp.eq.s32.totalorder %s588_s21, 1  ;;  %p156_p3 = scmp.ne.s32.totalorder %s771_s16, %s767_s15 }
   0x8   : > { %s1022_s23 = smov (%p31_p0, %s29_s23), 0  ;;  %p157_p5 = scmp.eq.s32.totalorder %s589_s22, 1 }
   0x9   : > { %p864_p4 = por %p151_p2, %p150_p1  ;;  %s137_s26 = ssub.s32 %s783_s19, %s1022_s23 }
   0xa   : > { %p594_p6 = scmp.ge.s32.totalorder %s787_s20, 1  ;;  %p138_p7 = scmp.eq.s32.totalorder %s137_s26, 0 }
   0xb   : > { %p871_p8 = por %p157_p5, %p156_p3  ;;  %p202_p9 = scmp.lt.s32.totalorder %s787_s20, 3 }
   0xc   : > { %s877_s28 = scalar_select %p138_p7, %s775_s17, %s140_s24  }
   0xd   : > { %p203_p10 = pnand %p594_p6, %p202_p9 }
   0xe   : > { %s235_s29 = sand.u32 (!%p203_p10), 1, %s771_s16   ;;  %v262_v0 = vld [vmem:[%s1009_s1] sm:$0xff] (!%p203_p10)  ;;  %v263_v1 = vld [vmem:[%s1009_s1 + $0x8] sm:$0xff] (!%p203_p10)  ;;  %v264_v2 = vld [vmem:[%s1009_s1 + $0x10] sm:$0xff] (!%p203_p10)  ;;  %v789_v3 = vmov (!%p203_p10), 0.0|0.0   ;;  %vm257_vm0 = vcmask (!%p203_p10), 7168  }
   0xf   : > { %206 = sbr.rel (%p203_p10) target bundleno = 1137 (0x471), region = 36  ;;  %s891_s10 = sshll.u32 (!%p203_p10), %s235_s29, 3  ;;  %625 = vmatprep.subr.bf16.mxu0 (!%p203_p10), %v789_v3  ;;  %v626_v4 = vpack.c.bf16 (!%p203_p10), %v263_v1, %v262_v0  ;;  %v265_v5 = vld [vmem:[%s1009_s1 + $0x18] sm:$0xff] (!%p203_p10)  ;;  %v790_v6 = vmov (!%p203_p10), 0.0   ;;  %vm791_vm1 = vmmov (!%p203_p10), 0   ;;  %vm267_vm2 = vcmask (!%p203_p10), 261120  }
  0x10   : > { %p238_p11 = scmp.lt.s32.totalorder (!%p203_p10), %s779_s18, 1  ;;  %259 = vst.msk [vmem:[#allocation3] sm:$0xff] (!%p203_p10), %vm257_vm0, %v790_v6  ;;  %260 = vst.msk [vmem:[#allocation4] sm:$0xff] (!%p203_p10), %vm257_vm0, %v790_v6  ;;  %622 = vmatprep.mubr.msk.f32.mxu0 (!%p203_p10), %vm791_vm1, %v790_v6  ;;  %v629_v7 = vpack.c.bf16 (!%p203_p10), %v265_v5, %v264_v2  ;;  %v792_v9 = vmov (!%p203_p10), 0   ;;  %v793_v10 = vmov (!%p203_p10), -inf   ;;  %vm342_vm3 = vcmask (!%p203_p10), 130048  }
  0x11   : > { %261 = vst.msk [vmem:[#allocation5] sm:$0xff] (!%p203_p10), %vm257_vm0, %v790_v6  ;;  %627 = vmatpush3.bf16.msra.mxu0 (!%p203_p10), %v626_v4  ;;  %695 = vset.pattern.permute.xlu0 (!%p203_p10), %v792_v9  ;;  %258 = vst.msk [vmem:[#allocation2] sm:$0xff] (!%p203_p10), %vm257_vm0, %v793_v10  ;;  %s600_s6 = sshll.u32 (!%p203_p10), %s779_s18, 3  ;;  %v599_v20 = vld [vmem:[%s1011_s3] ss:$0 sm:$0xff] (!%p203_p10)  ;;  %s237_s12 = scalar_lea.vmem (!%p203_p10), [#allocation6], %s891_s10 }
  0x12   : > { %628 = vmatprep.subr.bf16.mxu0 (!%p203_p10), %v789_v3  ;;  %s608_s7 = sadd.s32 (!%p203_p10), 8, %s600_s6  ;;  %p365_p12 = scmp.lt.s32.totalorder (!%p203_p10), %s600_s6, 16 }
  0x13   : > { %p602_p13 = scmp.gt.s32.totalorder (!%p203_p10), %s608_s7, 0 }
  0x15   : > { %630 = vmatpush3.bf16.msra.mxu0 (!%p203_p10), %v629_v7  ;;  %p914_p0 = pnand (!%p203_p10), %p602_p13, %p365_p12 }
  0x16   : > { %s239_s13 = scalar_select %p238_p11, %s779_s18, 1 }
  0x17   : > { %v794_v23 = vmov (!%p914_p0), 0   ;;  %v374_v24 = vlaneseq (!%p914_p0)  ;;  %v376_v25 = vstv (!%p914_p0), %s600_s6  ;;  %v795_v31 = vmov (!%p914_p0), 0.0   ;;  %v400_v40 = vld [vmem:[#allocation4] sm:$0xff] (!%p914_p0)  ;;  %v393_v46 = vld [vmem:[#allocation3] sm:$0xff] (!%p914_p0) }
  0x18   : > { %s596_s14 = sshll.u32 %s239_s13, 3  ;;  %v341_v15 = vld [vmem:[#allocation2] sm:$0xff]  ;;  %v407_v43 = vld [vmem:[#allocation5] sm:$0xff] (!%p914_p0) }
  0x19   : > { %s241_s24 = scalar_lea.vmem %s1008_s0, %s596_s14  ;;  %s249_s5 = scalar_lea.vmem %s1010_s2, %s596_s14  ;;  %v375_v26 = vshrl.u32 (!%p914_p0), %v374_v24, 7  ;;  %v379_v27 = vand.u32 (!%p914_p0), 127, %v374_v24 }
  0x1a   : > { %v266_v8 = vld [vmem:[%s241_s24] sm:$0xff] }
  0x1b   : > { %623 = vmatmul.mubr.msk.f32.vlgmr.msra.gmra.mrb[0].mxu0 %vm267_vm2, %v266_v8  ;;  %v352_v14 = vld [vmem:[%s249_s5] sm:$0xff]  ;;  %v377_v28 = vadd.s32 (!%p914_p0), %v376_v25, %v375_v26 }
  0x1d   : > { %vm382_vm5 = vcmp.ne.s32.totalorder (!%p914_p0), %v377_v28, %v379_v27 }
  0xee   : > { %v906_v11 = vpop.f32.mrb[0].mxu0 }
  0xef   : > { %v624_v12 = vpop.f32.mrb[1].mxu0  ;;  %v343_v13 = vsel %vm342_vm3, %v906_v11, -inf }
  0xf0   : > { %344 = vmax.xlane.f32.xlu0 %v343_v13 }
 0x106   : > { %355 = vperm.xlu0 %695, %v352_v14  }
 0x10a   : > { %698 = vset.pattern.permute.xlu0 (!%p914_p0), %v794_v23 }
 0x17d   : > { %v345_v16 = vpop.xlane.xlu0 %344 }
 0x17e   : > { %v346_v17 = vmax.f32 %v341_v15, %v345_v16 }
 0x180   : > { %v347_v18 = vsub.f32 %v341_v15, %v346_v17  ;;  %351 = vst.msk [vmem:[#allocation2] sm:$0xff] %vm257_vm0, %v346_v17  ;;  %386 = vperm.xlu0 (!%p914_p0), %698, %v346_v17  }
 0x182   : > { %v348_v19 = vmul.f32 1.442695, %v347_v18 }
 0x184   : > { %696 = vpow2.f32 %v348_v19 }
 0x185   : > { %v356_v21 = vpop.permute.xlu0 %355 }
 0x186   : > { %vm361_vm4 = vcmp.eq.s32.totalorder %v356_v21, %v599_v20 }
 0x187   : > { %vm383_vm6 = vmand (!%p914_p0), %vm361_vm4, %vm382_vm5 }
 0x188   : > { %373 = sbr.rel (%p914_p0) target bundleno = 674 (0x2a2), region = 44  ;;  %v401_v29 = vsel (!%p914_p0), %vm383_vm6, %v906_v11, 0.0  ;;  %v408_v32 = vsel (!%p914_p0), %vm383_vm6, 1.0, %v795_v31 }
 0x189   : > { %v402_v30 = vsel (!%p914_p0), %vm342_vm3, %v401_v29, 0.0  ;;  %v409_v33 = vsel (!%p914_p0), %vm342_vm3, %v408_v32, 0.0 }
 0x18a   : > { %403 = vadd.xlane.f32.xlu1 (!%p914_p0), %v402_v30 }
 0x18e   : > { %v922_v22 = vpop.eup %696  ;;  %410 = vadd.xlane.f32.xlu1 (!%p914_p0), %v409_v33 }
 0x18f   : > { %v394_v47 = vmul.f32 %v922_v22, %v393_v46 }
 0x1ff   : > { %v387_v34 = vpop.permute.xlu0 %386 }
 0x200   : > { %v389_v35 = vsub.f32 %v906_v11, %v387_v34 }
 0x202   : > { %v390_v36 = vmul.f32 1.442695, %v389_v35 }
 0x204   : > { %699 = vpow2.f32 %v390_v36 }
 0x20e   : > { %v700_v37 = vpop.eup %699 }
 0x20f   : > { %v392_v38 = vsel %vm382_vm5, %v700_v37, 0.0 }
 0x210   : > { %v395_v39 = vsel %vm342_vm3, %v392_v38, 0.0 }
 0x211   : > { %396 = vadd.xlane.f32.xlu0 %v395_v39 }
 0x217   : > { %v404_v41 = vpop.xlane.xlu1 %403 }
 0x218   : > { %v405_v42 = vadd.f32 %v404_v41, %v400_v40 }
 0x21a   : > { %406 = vst.msk [vmem:[#allocation4] sm:$0xff] %vm257_vm0, %v405_v42 }
 0x21b   : > { %v411_v44 = vpop.xlane.xlu1 %410 }
 0x21c   : > { %v412_v45 = vadd.f32 %v411_v44, %v407_v43 }
 0x21e   : > { %413 = vst.msk [vmem:[#allocation5] sm:$0xff] %vm257_vm0, %v412_v45 }
 0x29e   : > { %v397_v48 = vpop.xlane.xlu0 %396 }
 0x29f   : > { %v398_v49 = vadd.f32 %v397_v48, %v394_v47 }
 0x2a1   : > { %399 = vst.msk [vmem:[#allocation3] sm:$0xff] %vm257_vm0, %v398_v49 }
 0x2a2 PF: > { %416 = sbr.rel (!%p914_p0) target bundleno = 965 (0x3c5), region = 48  ;;  %v796_v50 = vmov (%p914_p0), 0   ;;  %v433_v51 = vsel (%p914_p0), %vm361_vm4, %v906_v11, 0.0  ;;  %v797_v53 = vmov (%p914_p0), 0.0   ;;  %v432_v61 = vld [vmem:[#allocation4] sm:$0xff] (%p914_p0)  ;;  %v439_v0 = vld [vmem:[#allocation5] sm:$0xff] (%p914_p0) }
 0x2a3   : > { %701 = vset.pattern.permute.xlu0 (%p914_p0), %v796_v50  ;;  %v434_v52 = vsel (%p914_p0), %vm342_vm3, %v433_v51, 0.0  ;;  %v440_v54 = vsel (%p914_p0), %vm361_vm4, 1.0, %v797_v53 }
 0x2a4   : > { %419 = vperm.xlu0 (%p914_p0), %701, %v346_v17   ;;  %435 = vadd.xlane.f32.xlu1 (%p914_p0), %v434_v52  ;;  %v441_v55 = vsel (%p914_p0), %vm342_vm3, %v440_v54, 0.0 }
 0x2a8   : > { %442 = vadd.xlane.f32.xlu1 (%p914_p0), %v441_v55  ;;  %v425_v3 = vld [vmem:[#allocation3] sm:$0xff] (%p914_p0) }
 0x2a9   : > { %v426_v4 = vmul.f32 %v922_v22, %v425_v3 }
 0x323   : > { %v420_v56 = vpop.permute.xlu0 %419 }
 0x324   : > { %v422_v57 = vsub.f32 %v906_v11, %v420_v56 }
 0x326   : > { %v423_v58 = vmul.f32 1.442695, %v422_v57 }
 0x328   : > { %702 = vpow2.f32 %v423_v58 }
 0x331   : > { %v436_v62 = vpop.xlane.xlu1 %435 }
 0x332   : > { %v703_v59 = vpop.eup %702  ;;  %v437_v63 = vadd.f32 %v436_v62, %v432_v61 }
 0x333   : > { %v427_v60 = vsel %vm342_vm3, %v703_v59, 0.0 }
 0x334   : > { %428 = vadd.xlane.f32.xlu0 %v427_v60  ;;  %438 = vst.msk [vmem:[#allocation4] sm:$0xff] %vm257_vm0, %v437_v63 }
 0x335   : > { %v443_v1 = vpop.xlane.xlu1 %442 }
 0x336   : > { %v444_v2 = vadd.f32 %v443_v1, %v439_v0 }
 0x338   : > { %445 = vst.msk [vmem:[#allocation5] sm:$0xff] %vm257_vm0, %v444_v2 }
 0x3c1   : > { %v429_v5 = vpop.xlane.xlu0 %428 }
 0x3c2   : > { %v430_v6 = vadd.f32 %v429_v5, %v426_v4 }
 0x3c4   : > { %431 = vst.msk [vmem:[#allocation3] sm:$0xff] %vm257_vm0, %v430_v6 }
 0x3c5 PF: > { %704 = vset.pattern.permute.xlu0 %v792_v9  ;;  %v454_v8 = vld [vmem:[#allocation5] sm:$0xff]  ;;  %v449_v12 = vld [vmem:[#allocation2] sm:$0xff]  ;;  %v455_v15 = vld [vmem:[#allocation4] sm:$0xff]  ;;  %s604_s13 = sshll.u32 %s779_s18, 7  ;;  %s482_s14 = sshll.u32 %s237_s12, 4  ;;  %s959_s14 = int_to_ptr.vmem [resolvable:$true] %s482_s14 }
 0x3c6   : > { %v458_v10 = vadd.f32 1e-08, %v454_v8  ;;  %s957_s24 = scalar_lea.hbm %s1012_s4, %s604_s13  ;;  %s469_s26 = scalar_lea.sflag [#allocation7], %s235_s29 }
 0x3c7   : > { %s709_s30 = scalar_lea.vmem %s959_s14, 128  ;;  %s798_s18 = smov [#allocation6]  }
 0x3c8   : > { %p710_p1 = scmp.ne.s32.totalorder %s959_s14, %s709_s30  ;;  %s713_s5 = sshll.u32 %s798_s18, 4  ;;  %s714_s5 = int_to_ptr.vmem [resolvable:$false] %s713_s5 }
 0x3c9   : > { %s715_s6 = scalar_lea.vmem %s714_s5, 256  ;;  %p716_p5 = scmp.lt.s32.totalorder %s959_s14, %s714_s5 }
 0x3ca   : > { %p711_p2 = pnand %p710_p1, %p864_p4  ;;  %p717_p6 = scmp.lt.s32.totalorder %s715_s6, %s709_s30 }
 0x3cb   : > { %v450_v7 = vld [vmem:[#allocation3] sm:$0xff] }
 0x3cc   : > { %705 = vlog2.f32 %v450_v7  ;;  %p712_p3 = pneg %p711_p2  ;;  %p718_p7 = por %p717_p6, %p716_p5 }
 0x3cd   : > { %707 = vrcp.f32 %v458_v10 }
 0x3ce   : > { %p719_p9 = pnand %p718_p7, %p712_p3 }
 0x3d6   : > { %v706_v11 = vpop.eup %705 }
 0x3d7   : > { %v452_v13 = vmul.f32 0.6931472, %v706_v11  ;;  %v708_v17 = vpop.eup %707 }
 0x3d9   : > { %v453_v14 = vadd.f32 %v452_v13, %v449_v12 }
 0x3db   : > { %v456_v16 = vmul.f32 %v454_v8, %v453_v14 }
 0x3dd   : > { %v457_v18 = vsub.f32 %v455_v15, %v456_v16 }
 0x3df   : > { %v460_v19 = vmul.f32 %v708_v17, %v457_v18 }
 0x3e1   : > { %v461_v9 = vmul.f32 -1.0, %v460_v19 }
 0x3e3   : > { %464 = vperm.xlu0 %704, %v461_v9  }
 0x462   : > { %v465_v20 = vpop.permute.xlu0 %464 }
 0x463   : > { %467 = vst [vmem:[%s237_s12] sm:$0xff] %v465_v20 }
 0x464   : > { %722 = shalt.err (!%p719_p9)
}
 0x465   : > { %s723_s29 = scalar_lea.hbm %s957_s24, 128  ;;  %s727_s8 = scalar_lea.hbm %s1012_s4, 256 }
 0x466   : > { %p724_p10 = scmp.ne.s32.totalorder %s957_s24, %s723_s29  ;;  %p728_p13 = scmp.lt.u32.totalorder %s957_s24, %s1012_s4 }
 0x467   : > { %p729_p0 = scmp.lt.u32.totalorder %s727_s8, %s723_s29  ;;  %p731_p2 = scmp.lt.u32.totalorder %s723_s29, %s957_s24 }
 0x468   : > { %p725_p11 = pnand %p724_p10, %p864_p4 }
 0x469   : > { %p730_p1 = por %p729_p0, %p728_p13 }
 0x46a   : > { %p726_p12 = pneg %p725_p11 }
 0x46b   : > { %p732_p3 = por %p731_p2, %p730_p1 }
 0x46d   : > { %p733_p5 = pnand %p732_p3, %p726_p12 }
 0x46f   : > { %736 = shalt.err (!%p733_p5)
}
 0x470   : > { %631 = dma.vmem_to_hbm [thread:$0]  (%p864_p4), %s959_s14, 128, %s957_s24, %s469_s26  }
 0x471 PF: > { %p637_p6 = scmp.ge.s32.totalorder %s787_s20, 2  ;;  %s494_s12 = sand.u32 1, %s767_s15  }
 0x472   : > { %s495_s13 = scalar_lea.sflag [#allocation7], %s494_s12 }
 0x473   : > { %p634_p7 = pnand %p637_p6, %p871_p8 }
 0x475   : > { %762 = dma.done.wait (!%p634_p7), %s495_s13, 128  }
 0x476   : > { %764 = vsyncadd (!%p634_p7), %s495_s13, 4294967168  ;;  %s17_s20 = sadd.s32 1, %s787_s20   ;;  %s1016_s15 = smov %s771_s16 }
 0x477   : > { %p14_p9 = scmp.ge.s32.totalorder %s17_s20, 4   ;;  %s1017_s16 = smov %s775_s17 }
 0x478   : > { %s1018_s17 = smov %s877_s28  ;;  %s1019_s18 = smov %s783_s19 }
 0x479   : > { %s1020_s19 = smov %s1022_s23  ;;  %16 = sbr.rel (!%p14_p9) target bundleno = 4 (0x4), region = 96 }
 0x480   :  { %500 = vsyncpa [#allocation7], 1 }
 0x481   :  { %502 = vsyncpa [#allocation7 + $0x1], 1 }

</bundles_post_ra>
